<compile_context>
chip_gen: v6e
topology: v6e:2x2x1
jax: 0.10.0
libtpu: 0.0.40
codegen_flags: <defaults>
</compile_context>

<pallas_src>
import jax
import jax.numpy as jnp
from jax.experimental import pallas as pl
from jax.experimental.pallas import tpu as pltpu

_FP8_E4M3_MAX = 448.0  # CUDA __nv_fp8_e4m3 saturates; plain astype would give NaN for overflow.


def _fp8_round(x):
    """Round-to-nearest fp8 e4m3 with saturation; result stored exactly in bf16."""
    x = jnp.clip(x, -_FP8_E4M3_MAX, _FP8_E4M3_MAX)
    return x.astype(jnp.float8_e4m3fn).astype(jnp.bfloat16)


def _pick_tile(dim, pref, align):
    """Largest tile t <= pref with t % align == 0 and dim % t == 0; else full dim."""
    if dim <= pref:
        return dim
    t = (pref // align) * align
    while t >= align:
        if dim % t == 0:
            return t
        t -= align
    # TODO(synk): pad + pl.cdiv grid for pathological dims; single full block for now.
    return dim


# --------------------------------------------------------------------------------------
# Standalone quantize kernel: any float dtype -> saturating fp8-e4m3 round -> bf16.
# Used once for the static weight, and for x when N/tn is large (xq re-read many times).
# --------------------------------------------------------------------------------------
def _quantize_kernel(x_ref, o_ref):
    o_ref[...] = _fp8_round(x_ref[...])


def fp8_quantize_bf16(x, *, row_tile=512, col_tile=2048):
    """(R, C) float -> (R, C) bfloat16 holding fp8-e4m3-rounded values."""
    R, C = x.shape
    tr = _pick_tile(R, row_tile, 8)
    tc = _pick_tile(C, col_tile, 128)
    return pl.pallas_call(
        _quantize_kernel,
        out_shape=jax.ShapeDtypeStruct((R, C), jnp.bfloat16),
        grid_spec=pltpu.PrefetchScalarGridSpec(
            num_scalar_prefetch=0,
            grid=(R // tr, C // tc),
            in_specs=[pl.BlockSpec((tr, tc), lambda i, j: (i, j))],
            out_specs=pl.BlockSpec((tr, tc), lambda i, j: (i, j)),
        ),
        compiler_params=pltpu.CompilerParams(
            dimension_semantics=("parallel", "parallel"),
        ),
    )(x)


def fp8_prep_weight(weight):
    """One-time prep of the static (N, K) weight: fp8-round, store bf16, transpose to (K, N)."""
    return fp8_quantize_bf16(weight).T  # one-time HBM-side transpose, amortized over all calls


# --------------------------------------------------------------------------------------
# Tiled matmul kernel: LHS fp8-round fused on the VPU, canonical (tm,tk)x(tk,tn) MXU
# contraction, f32 accumulation directly into the resident output block (no scratch).
# --------------------------------------------------------------------------------------
def _fp8_matmul_kernel(x_ref, wt_ref, o_ref):
    @pl.when(pl.program_id(2) == 0)
    def _():
        o_ref[...] = jnp.zeros_like(o_ref)

    xq = _fp8_round(x_ref[...])  # no-op (exact) if the tile is already fp8-rounded bf16
    o_ref[...] += jnp.dot(xq, wt_ref[...], preferred_element_type=jnp.float32)


def fp8_matmul(x_lhs, w_t_q, *, tm=512, tn=1024, tk=512):
    """x_lhs: (M, K) float (raw or pre-quantized bf16), w_t_q: (K, N) bf16 -> (M, N) f32."""
    M, K = x_lhs.shape
    K2, N = w_t_q.shape
    assert K == K2, (K, K2)
    tm = _pick_tile(M, tm, 8)
    tn = _pick_tile(N, tn, 128)
    tk = _pick_tile(K, tk, 128)

    return pl.pallas_call(
        _fp8_matmul_kernel,
        out_shape=jax.ShapeDtypeStruct((M, N), jnp.float32),
        grid_spec=pltpu.PrefetchScalarGridSpec(
            num_scalar_prefetch=0,
            grid=(M // tm, N // tn, K // tk),
            in_specs=[
                pl.BlockSpec((tm, tk), lambda i, j, k: (i, k)),  # x tile (quantized in-kernel)
                pl.BlockSpec((tk, tn), lambda i, j, k: (k, j)),  # pre-transposed weight tile
            ],
            out_specs=pl.BlockSpec((tm, tn), lambda i, j, k: (i, j)),
        ),
        compiler_params=pltpu.CompilerParams(
            dimension_semantics=("parallel", "parallel", "arbitrary"),
        ),
    )(x_lhs, w_t_q)


# --------------------------------------------------------------------------------------
# Module-equivalent forward.
# --------------------------------------------------------------------------------------
def fp8_module_forward(x, w_t_q, *, tm=512, tn=1024, tk=512):
    """x: (M, K) float, w_t_q: (K, N) pre-quantized/pre-transposed bf16 -> (M, N) float32."""
    M, K = x.shape
    _, N = w_t_q.shape
    n_tiles = pl.cdiv(N, _pick_tile(N, tn, 128))
    if n_tiles <= 2:
        # Small N: fuse x quantization into the matmul (saves an HBM round-trip of xq
        # plus a kernel launch; x is re-quantized at most twice on the VPU).
        return fp8_matmul(x, w_t_q, tm=tm, tn=tn, tk=tk)
    # Large N: pre-quantize x once so the 2-byte xq is what gets re-streamed N/tn times.
    xq = fp8_quantize_bf16(x)
    return fp8_matmul(xq, w_t_q, tm=tm, tn=tn, tk=tk)


if __name__ == "__main__":
    # Small shapes consistent with the module: batch=8, in_features=128, out_features=128.
    batch, in_features, out_features = 8, 128, 128

    key = jax.random.PRNGKey(0)
    kx, kw = jax.random.split(key)
    x = jax.random.normal(kx, (batch, in_features), dtype=jnp.float32)
    # nn.Parameter(torch.randn(out_features, in_features)) analogue.
    weight = jax.random.normal(kw, (out_features, in_features), dtype=jnp.float32)

    # Static parameter: quantize + transpose once, reuse for every forward call.
    weight_t_q = fp8_prep_weight(weight)

    out = fp8_module_forward(x, weight_t_q)
    out = jax.block_until_ready(out)

    # Pure-JAX reference with identical semantics (saturating fp8 e4m3 round, f32 accum).
    xr = jnp.clip(x, -_FP8_E4M3_MAX, _FP8_E4M3_MAX).astype(jnp.float8_e4m3fn).astype(jnp.float32)
    wr = jnp.clip(weight, -_FP8_E4M3_MAX, _FP8_E4M3_MAX).astype(jnp.float8_e4m3fn).astype(jnp.float32)
    ref = jnp.dot(xr, wr.T, preferred_element_type=jnp.float32)

    assert out.shape == (batch, out_features)
    assert jnp.allclose(out, ref, atol=1e-2, rtol=1e-3), float(jnp.max(jnp.abs(out - ref)))

    print("KERNEL_OK")
</pallas_src>

<mosaic_0001>
module attributes {stable_mosaic.version = 11 : i64} {
  func.func @_quantize_kernel(%arg0: i32, %arg1: i32, %arg2: memref<128x128xf32, #tpu.memory_space<vmem>>, %arg3: memref<128x128xbf16, #tpu.memory_space<vmem>>) attributes {dimension_semantics = [#tpu.dimension_semantics<parallel>, #tpu.dimension_semantics<parallel>], iteration_bounds = array<i64: 1, 1>, scalar_prefetch = 0 : i64, scratch_operands = 0 : i64, tpu.core_type = #tpu.core_type<tc>, window_params = [{transform_indices = @transform_0, window_bounds = array<i64: 128, 128>}, {transform_indices = @transform_1, window_bounds = array<i64: 128, 128>}]} {
    %c0 = arith.constant 0 : index
    %c0_0 = arith.constant 0 : index
    %0 = vector.load %arg2[%c0, %c0_0] : memref<128x128xf32, #tpu.memory_space<vmem>>, vector<128x128xf32>
    %cst = arith.constant -4.480000e+02 : f32
    %cst_1 = arith.constant 4.480000e+02 : f32
    %1 = vector.broadcast %cst : f32 to vector<128x128xf32>
    %2 = arith.maximumf %1, %0 : vector<128x128xf32>
    %3 = vector.broadcast %cst_1 : f32 to vector<128x128xf32>
    %4 = arith.minimumf %3, %2 : vector<128x128xf32>
    %5 = arith.truncf %4 : vector<128x128xf32> to vector<128x128xf8E4M3FN>
    %6 = arith.extf %5 : vector<128x128xf8E4M3FN> to vector<128x128xbf16>
    %c0_2 = arith.constant 0 : index
    %c0_3 = arith.constant 0 : index
    %7 = vector.load %arg3[%c0_2, %c0_3] : memref<128x128xbf16, #tpu.memory_space<vmem>>, vector<128x128xbf16>
    tpu.vector_store %arg3[%c0_2, %c0_3], %6 {strides = array<i32>} : memref<128x128xbf16, #tpu.memory_space<vmem>>, vector<128x128xbf16>,
    return
  }
  func.func @transform_0(%arg0: i32, %arg1: i32) -> (i32, i32) {
    %c0_i32 = arith.constant 0 : i32
    return %arg0, %arg1 : i32, i32
  }
  func.func @transform_1(%arg0: i32, %arg1: i32) -> (i32, i32) {
    %c0_i32 = arith.constant 0 : i32
    return %arg0, %arg1 : i32, i32
  }
}

</mosaic_0001>

<bundles_post_ra>
// kernel: tpu_custom_call.1
= control target key start
LH: loop header
LB: loop body
LE: loop exit
PB: predicated region body
PF: predicated region fallthrough
CT: control target
= control target key end

     0   :  { %6 = vsyncpa [#allocation3], 0  ;;  %s1500_s0 = inlined_call_operand.hbm [shape: f32[128,128], index: 0, kind: input, shape index: {}]   ;;  %s1501_s1 = inlined_call_operand.hbm [shape: bf16[128,128], index: 1, kind: output, shape index: {}]  }
   0x1   :  { %7 = vsyncpa [#allocation4], 0  ;;  %s1173_s6 = smov [#allocation2]  }
   0x2   :  { %s13_s7 = sshll.u32 %s1173_s6, 4  ;;  %s14_s7 = int_to_ptr.vmem [resolvable:$true] %s13_s7 }
   0x3   :  { %s1137_s8 = scalar_lea.vmem %s14_s7, 2048  ;;  %p1142_p1 = scmp.lt.s32.totalorder %s14_s7, %s14_s7 }
   0x4   :  { %p1138_p0 = scmp.ne.s32.totalorder %s14_s7, %s1137_s8  ;;  %p1143_p2 = scmp.lt.s32.totalorder %s1137_s8, %s1137_s8 }
   0x6   :  { %p1144_p3 = por %p1143_p2, %p1142_p1 }
   0x8   :  { %p1145_p4 = pnand %p1144_p3, %p1138_p0 }
   0xa   :  { %1148 = shalt.err (!%p1145_p4)
}
   0xb   :  { %s1174_s9 = smov 128   ;;  %s1175_s10 = smov 8  }
   0xc   :  { %19 = dma.hbm_to_vmem [thread:$0]  %s1500_s0, 2048, %s14_s7, [#allocation3], %s1174_s9, %s1174_s9, %s1175_s10  }
   0xd   :  { %1169 = dma.done.wait [#allocation3], 2048  }
   0xe   :  { %1170 = vsyncadd [#allocation3], 4294965248  ;;  %v23_v0 = vld [vmem:[#allocation2] sm:$0xff]  ;;  %v24_v1 = vld [vmem:[#allocation2 + $0x8] sm:$0xff] }
   0xf   :  { %v25_v2 = vld [vmem:[#allocation2 + $0x10] sm:$0xff]  ;;  %v26_v3 = vld [vmem:[#allocation2 + $0x18] sm:$0xff]  ;;  %v27_v4 = vld [vmem:[#allocation2 + $0x20] sm:$0xff]  ;;  %v1012_v6 = vclamps-f32 %v23_v0, 448.0  ;;  %v1192_v10 = vclamps-f32 %v24_v1, 448.0 }
  0x10   :  { %v28_v5 = vld [vmem:[#allocation2 + $0x28] sm:$0xff]  ;;  %v29_v7 = vld [vmem:[#allocation2 + $0x30] sm:$0xff]  ;;  %v30_v8 = vld [vmem:[#allocation2 + $0x38] sm:$0xff]  ;;  %v1194_v12 = vclamps-f32 %v25_v2, 448.0  ;;  %v1196_v15 = vclamps-f32 %v26_v3, 448.0  ;;  %v1198_v16 = vclamps-f32 %v27_v4, 448.0 }
  0x11   :  { %v31_v9 = vld [vmem:[#allocation2 + $0x40] sm:$0xff]  ;;  %v32_v11 = vld [vmem:[#allocation2 + $0x48] sm:$0xff]  ;;  %v33_v13 = vld [vmem:[#allocation2 + $0x50] sm:$0xff]  ;;  %v1200_v17 = vclamps-f32 %v28_v5, 448.0  ;;  %v1202_v18 = vclamps-f32 %v29_v7, 448.0  ;;  %v1204_v19 = vclamps-f32 %v30_v8, 448.0  ;;  %vm86_vm0 = vcmp.ne.f32.partialorder %v1012_v6, %v1012_v6 }
  0x12   :  { %v34_v14 = vld [vmem:[#allocation2 + $0x58] sm:$0xff]  ;;  %v1206_v20 = vclamps-f32 %v31_v9, 448.0  ;;  %v71_v21 = vand.u32 2147483647, %v1012_v6  ;;  %v1208_v22 = vclamps-f32 %v32_v11, 448.0  ;;  %v72_v23 = vand.u32 2147483648, %v1012_v6 }
  0x13   :  { %v77_v24 = vshrl.u32 %v1012_v6, 20  ;;  %v92_v25 = vand.u32 2147483647, %v1192_v10  ;;  %v1211_v26 = vclamps-f32 %v33_v13, 448.0  ;;  %v1213_v27 = vclamps-f32 %v34_v14, 448.0  ;;  %v35_v8 = vld [vmem:[#allocation2 + $0x60] sm:$0xff] }
  0x14   :  { %v74_v28 = vadd.f32 1182793728, %v71_v21  ;;  %v79_v29 = vadd.s32 3288858623, %v71_v21  ;;  %v93_v31 = vand.u32 2147483648, %v1192_v10  ;;  %vm107_vm1 = vcmp.ne.f32.partialorder %v1192_v10, %v1192_v10 }
  0x15   :  { %v78_v30 = vand.u32 1, %v77_v24  ;;  %v95_v32 = vadd.f32 1182793728, %v92_v25  ;;  %vm82_vm2 = vcmp.lt.s32.totalorder %v71_v21, 1015021568  ;;  %vm84_vm3 = vcmp.ge.s32.totalorder %v71_v21, 1139277825 }
  0x16   :  { %v98_v33 = vshrl.u32 %v1192_v10, 20  ;;  %v100_v34 = vadd.s32 3288858623, %v92_v25  ;;  %v1028_v35 = vadd.s32 3112173568, %v74_v28  ;;  %v88_v37 = vshrl.u32 %v72_v23, 24 }
  0x17   :  { %v80_v36 = vadd.s32 %v79_v29, %v78_v30  ;;  %vm103_vm4 = vcmp.lt.s32.totalorder %v92_v25, 1015021568  ;;  %v1029_v38 = vadd.s32 3112173568, %v95_v32  ;;  %v113_v40 = vand.u32 2147483647, %v1194_v12 }
  0x18   :  { %v99_v39 = vand.u32 1, %v98_v33  ;;  %v119_v41 = vshrl.u32 %v1194_v12, 20  ;;  %vm105_vm5 = vcmp.ge.s32.totalorder %v92_v25, 1139277825  ;;  %v109_v43 = vshrl.u32 %v93_v31, 24 }
  0x19   :  { %v81_v42 = vshrl.u32 %v80_v36, 20  ;;  %v134_v44 = vand.u32 2147483647, %v1196_v15  ;;  %v116_v46 = vadd.f32 1182793728, %v113_v40  ;;  %v121_v48 = vadd.s32 3288858623, %v113_v40 }
  0x1a   :  { %v101_v45 = vadd.s32 %v100_v34, %v99_v39  ;;  %v120_v47 = vand.u32 1, %v119_v41  ;;  %v114_v50 = vand.u32 2147483648, %v1194_v12  ;;  %vm124_vm6 = vcmp.lt.s32.totalorder %v113_v40, 1015021568 }
  0x1b   :  { %v83_v49 = vsel %vm82_vm2, %v1028_v35, %v81_v42  ;;  %vm128_vm7 = vcmp.ne.f32.partialorder %v1194_v12, %v1194_v12  ;;  %v1030_v53 = vadd.s32 3112173568, %v116_v46  ;;  %v137_v56 = vadd.f32 1182793728, %v134_v44 }
  0x1c   :  { %v85_v51 = vsel %vm84_vm3, 127, %v83_v49  ;;  %v102_v52 = vshrl.u32 %v101_v45, 20  ;;  %v122_v54 = vadd.s32 %v121_v48, %v120_v47  ;;  %v140_v57 = vshrl.u32 %v1196_v15, 20 }
  0x1d   :  { %v87_v55 = vsel %vm86_vm0, 127, %v85_v51  ;;  %v142_v58 = vadd.s32 3288858623, %v134_v44  ;;  %vm126_vm8 = vcmp.ge.s32.totalorder %v113_v40, 1139277825  ;;  %v130_v63 = vshrl.u32 %v114_v50, 24 }
  0x1e   :  { %v89_v59 = vor.u32 %v88_v37, %v87_v55  ;;  %v104_v60 = vsel %vm103_vm4, %v1029_v38, %v102_v52  ;;  %v123_v61 = vshrl.u32 %v122_v54, 20  ;;  %v135_v0 = vand.u32 2147483648, %v1196_v15 }
  0x1f   :  { %v106_v62 = vsel %vm105_vm5, 127, %v104_v60  ;;  %v141_v1 = vand.u32 1, %v140_v57  ;;  %v1031_v4 = vadd.s32 3112173568, %v137_v56  ;;  %vm145_vm9 = vcmp.lt.s32.totalorder %v134_v44, 1015021568 }
  0x20   :  { %v108_v2 = vsel %vm107_vm1, 127, %v106_v62  ;;  %v125_v3 = vsel %vm124_vm6, %v1030_v53, %v123_v61  ;;  %vm147_vm10 = vcmp.ge.s32.totalorder %v134_v44, 1139277825  ;;  %v90_v9 = vor.u32 4294967040, %v89_v59  ;;  %v36_v44 = vld [vmem:[#allocation2 + $0x68] sm:$0xff] }
  0x21   :  { %v110_v5 = vor.u32 %v109_v43, %v108_v2  ;;  %v127_v6 = vsel %vm126_vm8, 127, %v125_v3  ;;  %v143_v7 = vadd.s32 %v142_v58, %v141_v1  ;;  %v159_v13 = vand.u32 2147483647, %v1198_v16 }
  0x22   :  { %v129_v11 = vsel %vm128_vm7, 127, %v127_v6  ;;  %v165_v14 = vshrl.u32 %v1198_v16, 20  ;;  %vm149_vm11 = vcmp.ne.f32.partialorder %v1196_v15, %v1196_v15  ;;  %v151_v23 = vshrl.u32 %v135_v0, 24 }
  0x23   :  { %v131_v10 = vor.u32 %v130_v63, %v129_v11  ;;  %v144_v21 = vshrl.u32 %v143_v7, 20  ;;  %v111_v24 = vor.u32 4294967040, %v110_v5  ;;  %v162_v25 = vadd.f32 1182793728, %v159_v13 }
  0x24   :  { %v166_v28 = vand.u32 1, %v165_v14  ;;  %v167_v29 = vadd.s32 3288858623, %v159_v13  ;;  %v1243_v30 = vclamps-f32 %v35_v8, 448.0  ;;  %v160_v12 = vand.u32 2147483648, %v1198_v16 }
  0x25   :  { %v146_v31 = vsel %vm145_vm9, %v1031_v4, %v144_v21  ;;  %vm174_vm12 = vcmp.ne.f32.partialorder %v1198_v16, %v1198_v16  ;;  %v1032_v33 = vadd.s32 3112173568, %v162_v25  ;;  %vm170_vm13 = vcmp.lt.s32.totalorder %v159_v13, 1015021568 }
  0x26   :  { %v148_v32 = vsel %vm147_vm10, 127, %v146_v31  ;;  %v168_v34 = vadd.s32 %v167_v29, %v166_v28  ;;  %v132_v15 = vor.u32 4294967040, %v131_v10  ;;  %v180_v36 = vand.u32 2147483647, %v1200_v17 }
  0x27   :  { %v150_v35 = vsel %vm149_vm11, 127, %v148_v32  ;;  %v186_v37 = vshrl.u32 %v1200_v17, 20  ;;  %v155_v39 = vpack.c.b16 %v111_v24, %v90_v9  ;;  %vm172_vm14 = vcmp.ge.s32.totalorder %v159_v13, 1139277825 }
  0x28   :  { %v152_v38 = vor.u32 %v151_v23, %v150_v35  ;;  %v169_v40 = vshrl.u32 %v168_v34, 20  ;;  %v183_v41 = vadd.f32 1182793728, %v180_v36  ;;  %v188_v43 = vadd.s32 3288858623, %v180_v36 }
  0x29   :  { %v187_v42 = vand.u32 1, %v186_v37  ;;  %v201_v45 = vand.u32 2147483647, %v1202_v18  ;;  %v176_v48 = vshrl.u32 %v160_v12, 24  ;;  %v181_v49 = vand.u32 2147483648, %v1200_v17 }
  0x2a   :  { %v153_v46 = vor.u32 4294967040, %v152_v38  ;;  %v171_v47 = vsel %vm170_vm13, %v1032_v33, %v169_v40  ;;  %v1033_v51 = vadd.s32 3112173568, %v183_v41  ;;  %vm191_vm15 = vcmp.lt.s32.totalorder %v180_v36, 1015021568 }
  0x2b   :  { %v173_v50 = vsel %vm172_vm14, 127, %v171_v47  ;;  %v189_v52 = vadd.s32 %v188_v43, %v187_v42  ;;  %v204_v55 = vadd.f32 1182793728, %v201_v45  ;;  %v207_v56 = vshrl.u32 %v1202_v18, 20 }
  0x2c   :  { %v156_v53 = vpack.c.b16 %v153_v46, %v132_v15  ;;  %v175_v54 = vsel %vm174_vm12, 127, %v173_v50  ;;  %v1258_v57 = vclamps-f32 %v36_v44, 448.0  ;;  %vm193_vm0 = vcmp.ge.s32.totalorder %v180_v36, 1139277825 }
  0x2d   :  { %v190_v58 = vshrl.u32 %v189_v52, 20  ;;  %v209_v59 = vadd.s32 3288858623, %v201_v45  ;;  %vm195_vm1 = vcmp.ne.f32.partialorder %v1200_v17, %v1200_v17  ;;  %v197_v61 = vshrl.u32 %v181_v49, 24 }
  0x2e   :  { %v1260_v60 = vpack.c.b8 %v156_v53, %v155_v39  ;;  %v208_v62 = vand.u32 1, %v207_v56  ;;  %v177_v63 = vor.u32 %v176_v48, %v175_v54  ;;  %v202_v16 = vand.u32 2147483648, %v1202_v18 }
  0x2f   :  { %v192_v0 = vsel %vm191_vm15, %v1033_v51, %v190_v58  ;;  %vm212_vm2 = vcmp.lt.s32.totalorder %v201_v45, 1015021568  ;;  %v1034_v2 = vadd.s32 3112173568, %v204_v55  ;;  %v222_v4 = vand.u32 2147483647, %v1204_v19 }
  0x30   :  { %v194_v1 = vsel %vm193_vm0, 127, %v192_v0  ;;  %v210_v3 = vadd.s32 %v209_v59, %v208_v62  ;;  %vm214_vm3 = vcmp.ge.s32.totalorder %v201_v45, 1139277825  ;;  %v228_v6 = vshrl.u32 %v1204_v19, 20 }
  0x31   :  { %v196_v5 = vsel %vm195_vm1, 127, %v194_v1  ;;  %v247_v7 = vand.u32 2147483647, %v1206_v20  ;;  %v225_v9 = vadd.f32 1182793728, %v222_v4  ;;  %v230_v11 = vadd.s32 3288858623, %v222_v4 }
  0x32   :  { %v198_v8 = vor.u32 %v197_v61, %v196_v5  ;;  %v211_v17 = vshrl.u32 %v210_v3, 20  ;;  %v178_v13 = vor.u32 4294967040, %v177_v63  ;;  %vm216_vm4 = vcmp.ne.f32.partialorder %v1202_v18, %v1202_v18 }
  0x33   :  { %v223_v14 = vand.u32 2147483648, %v1204_v19  ;;  %v229_v10 = vand.u32 1, %v228_v6  ;;  %v218_v24 = vshrl.u32 %v202_v16, 24  ;;  %v1035_v25 = vadd.s32 3112173568, %v225_v9 }
  0x34   :  { %v199_v21 = vor.u32 4294967040, %v198_v8  ;;  %v213_v23 = vsel %vm212_vm2, %v1034_v2, %v211_v17  ;;  %v250_v31 = vadd.f32 1182793728, %v247_v7  ;;  %v253_v12 = vshrl.u32 %v1206_v20, 20 }
  0x35   :  { %v215_v28 = vsel %vm214_vm3, 127, %v213_v23  ;;  %v231_v29 = vadd.s32 %v230_v11, %v229_v10  ;;  %vm233_vm5 = vcmp.lt.s32.totalorder %v222_v4, 1015021568  ;;  %vm237_vm6 = vcmp.ne.f32.partialorder %v1204_v19, %v1204_v19 }
  0x36   :  { %v217_v32 = vsel %vm216_vm4, 127, %v215_v28  ;;  %v255_v33 = vadd.s32 3288858623, %v247_v7  ;;  %vm235_vm7 = vcmp.ge.s32.totalorder %v222_v4, 1139277825  ;;  %v239_v34 = vshrl.u32 %v223_v14, 24 }
  0x37   :  { %v232_v18 = vshrl.u32 %v231_v29, 20  ;;  %v254_v15 = vand.u32 1, %v253_v12  ;;  %v219_v35 = vor.u32 %v218_v24, %v217_v32  ;;  %v243_v36 = vpack.c.b16 %v199_v21, %v178_v13  ;;  %v37_v4 = vld [vmem:[#allocation2 + $0x70] sm:$0xff] }
  0x38   :  { %v248_v37 = vand.u32 2147483648, %v1206_v20  ;;  %v268_v38 = vand.u32 2147483647, %v1208_v22  ;;  %v1036_v40 = vadd.s32 3112173568, %v250_v31  ;;  %vm258_vm8 = vcmp.lt.s32.totalorder %v247_v7, 1015021568 }
  0x39   :  { %v234_v39 = vsel %vm233_vm5, %v1035_v25, %v232_v18  ;;  %v256_v41 = vadd.s32 %v255_v33, %v254_v15  ;;  %v274_v45 = vshrl.u32 %v1208_v22, 20  ;;  %vm260_vm9 = vcmp.ge.s32.totalorder %v247_v7, 1139277825 }
  0x3a   :  { %v236_v42 = vsel %vm235_vm7, 127, %v234_v39  ;;  %v271_v43 = vadd.f32 1182793728, %v268_v38  ;;  %v276_v44 = vadd.s32 3288858623, %v268_v38  ;;  %vm262_vm10 = vcmp.ne.f32.partialorder %v1206_v20, %v1206_v20 }
  0x3b   :  { %v238_v46 = vsel %vm237_vm6, 127, %v236_v42  ;;  %v257_v47 = vshrl.u32 %v256_v41, 20  ;;  %v220_v48 = vor.u32 4294967040, %v219_v35  ;;  %v264_v50 = vshrl.u32 %v248_v37, 24 }
  0x3c   :  { %v240_v49 = vor.u32 %v239_v34, %v238_v46  ;;  %v275_v51 = vand.u32 1, %v274_v45  ;;  %v269_v53 = vand.u32 2147483648, %v1208_v22  ;;  %v1037_v54 = vadd.s32 3112173568, %v271_v43  ;;  %v38_v43 = vld [vmem:[#allocation2 + $0x78] sm:$0xff] }
  0x3d   :  { %v259_v52 = vsel %vm258_vm8, %v1036_v40, %v257_v47  ;;  %v289_v55 = vand.u32 2147483647, %v1211_v26  ;;  %v295_v19 = vshrl.u32 %v1211_v26, 20  ;;  %vm279_vm11 = vcmp.lt.s32.totalorder %v268_v38, 1015021568 }
  0x3e   :  { %v241_v56 = vor.u32 4294967040, %v240_v49  ;;  %v261_v58 = vsel %vm260_vm9, 127, %v259_v52  ;;  %v277_v59 = vadd.s32 %v276_v44, %v275_v51  ;;  %vm281_vm12 = vcmp.ge.s32.totalorder %v268_v38, 1139277825 }
  0x3f   :  { %v292_v61 = vadd.f32 1182793728, %v289_v55  ;;  %v297_v62 = vadd.s32 3288858623, %v289_v55  ;;  %v290_v16 = vand.u32 2147483648, %v1211_v26  ;;  %v296_v1 = vand.u32 1, %v295_v19 }
  0x40   :  { %v244_v63 = vpack.c.b16 %v241_v56, %v220_v48  ;;  %v278_v0 = vshrl.u32 %v277_v59, 20  ;;  %v263_v2 = vsel %vm262_vm10, 127, %v261_v58  ;;  %vm283_vm13 = vcmp.ne.f32.partialorder %v1208_v22, %v1208_v22 }
  0x41   :  { %v285_v3 = vshrl.u32 %v269_v53, 24  ;;  %vm300_vm14 = vcmp.lt.s32.totalorder %v289_v55, 1015021568  ;;  %v1038_v7 = vadd.s32 3112173568, %v292_v61  ;;  %v298_v8 = vadd.s32 %v297_v62, %v296_v1 }
  0x42   :  { %v1292_v5 = vpack.c.b8 %v244_v63, %v243_v36  ;;  %v280_v6 = vsel %vm279_vm11, %v1037_v54, %v278_v0  ;;  %vm302_vm15 = vcmp.ge.s32.totalorder %v289_v55, 1139277825  ;;  %v310_v9 = vand.u32 2147483647, %v1213_v27 }
  0x43   :  { %v282_v17 = vsel %vm281_vm12, 127, %v280_v6  ;;  %v316_v11 = vshrl.u32 %v1213_v27, 20  ;;  %v299_v13 = vshrl.u32 %v298_v8, 20  ;;  %vm304_vm0 = vcmp.ne.f32.partialorder %v1211_v26, %v1211_v26 }
  0x44   :  { %v284_v20 = vsel %vm283_vm13, 127, %v282_v17  ;;  %v306_v22 = vshrl.u32 %v290_v16, 24  ;;  %v313_v14 = vadd.f32 1182793728, %v310_v9  ;;  %v318_v21 = vadd.s32 3288858623, %v310_v9 }
  0x45   :  { %v317_v10 = vand.u32 1, %v316_v11  ;;  %v335_v23 = vand.u32 2147483647, %v1243_v30  ;;  %v1300_v24 = vclamps-f32 %v37_v4, 448.0  ;;  %v265_v25 = vor.u32 %v264_v50, %v263_v2 }
  0x46   :  { %v301_v28 = vsel %vm300_vm14, %v1038_v7, %v299_v13  ;;  %v311_v29 = vand.u32 2147483648, %v1213_v27  ;;  %v286_v31 = vor.u32 %v285_v3, %v284_v20  ;;  %v1039_v32 = vadd.s32 3112173568, %v313_v14 }
  0x47   :  { %v303_v12 = vsel %vm302_vm15, 127, %v301_v28  ;;  %v319_v33 = vadd.s32 %v318_v21, %v317_v10  ;;  %vm321_vm1 = vcmp.lt.s32.totalorder %v310_v9, 1015021568  ;;  %v338_v26 = vadd.f32 1182793728, %v335_v23 }
  0x48   :  { %v305_v18 = vsel %vm304_vm0, 127, %v303_v12  ;;  %v341_v34 = vshrl.u32 %v1243_v30, 20  ;;  %vm323_vm2 = vcmp.ge.s32.totalorder %v310_v9, 1139277825  ;;  %v343_v36 = vadd.s32 3288858623, %v335_v23 }
  0x49   :  { %v307_v15 = vor.u32 %v306_v22, %v305_v18  ;;  %v320_v35 = vshrl.u32 %v319_v33, 20  ;;  %vm325_vm3 = vcmp.ne.f32.partialorder %v1213_v27, %v1213_v27  ;;  %v327_v37 = vshrl.u32 %v311_v29, 24 }
  0x4a   :  { %v342_v38 = vand.u32 1, %v341_v34  ;;  %v266_v39 = vor.u32 4294967040, %v265_v25  ;;  %v287_v40 = vor.u32 4294967040, %v286_v31  ;;  %v1040_v42 = vadd.s32 3112173568, %v338_v26 }
  0x4b   :  { %v322_v41 = vsel %vm321_vm1, %v1039_v32, %v320_v35  ;;  %vm346_vm4 = vcmp.lt.s32.totalorder %v335_v23, 1015021568  ;;  %v356_v46 = vand.u32 2147483647, %v1258_v57  ;;  %v308_v47 = vor.u32 4294967040, %v307_v15 }
  0x4c   :  { %v324_v45 = vsel %vm323_vm2, 127, %v322_v41  ;;  %v344_v44 = vadd.s32 %v343_v36, %v342_v38  ;;  %v362_v49 = vshrl.u32 %v1258_v57, 20  ;;  %v377_v50 = vand.u32 2147483647, %v1300_v24 }
  0x4d   :  { %v326_v48 = vsel %vm325_vm3, 127, %v324_v45  ;;  %v359_v52 = vadd.f32 1182793728, %v356_v46  ;;  %v364_v53 = vadd.s32 3288858623, %v356_v46  ;;  %v1027_v54 = vclamps-f32 %v38_v43, 448.0 }
  0x4e   :  { %v328_v51 = vor.u32 %v327_v37, %v326_v48  ;;  %v345_v27 = vshrl.u32 %v344_v44, 20  ;;  %v331_v55 = vpack.c.b16 %v287_v40, %v266_v39  ;;  %v336_v56 = vand.u32 2147483648, %v1243_v30 }
  0x4f   :  { %v363_v58 = vand.u32 1, %v362_v49  ;;  %vm348_vm5 = vcmp.ge.s32.totalorder %v335_v23, 1139277825  ;;  %vm350_vm6 = vcmp.ne.f32.partialorder %v1243_v30, %v1243_v30  ;;  %v1041_v61 = vadd.s32 3112173568, %v359_v52 }
  0x50   :  { %v329_v59 = vor.u32 4294967040, %v328_v51  ;;  %v347_v19 = vsel %vm346_vm4, %v1040_v42, %v345_v27  ;;  %v380_v63 = vadd.f32 1182793728, %v377_v50  ;;  %v383_v0 = vshrl.u32 %v1300_v24, 20 }
  0x51   :  { %v365_v62 = vadd.s32 %v364_v53, %v363_v58  ;;  %v357_v1 = vand.u32 2147483648, %v1258_v57  ;;  %vm367_vm7 = vcmp.lt.s32.totalorder %v356_v46, 1015021568  ;;  %v385_v2 = vadd.s32 3288858623, %v377_v50 }
  0x52   :  { %v332_v16 = vpack.c.b16 %v329_v59, %v308_v47  ;;  %v352_v3 = vshrl.u32 %v336_v56, 24  ;;  %vm369_vm8 = vcmp.ge.s32.totalorder %v356_v46, 1139277825  ;;  %v384_v6 = vand.u32 1, %v383_v0 }
  0x53   :  { %v366_v4 = vshrl.u32 %v365_v62, 20  ;;  %v349_v8 = vsel %vm348_vm5, 127, %v347_v19  ;;  %vm371_vm9 = vcmp.ne.f32.partialorder %v1258_v57, %v1258_v57  ;;  %v378_v17 = vand.u32 2147483648, %v1300_v24 }
  0x54   :  { %v1316_v7 = vpack.c.b8 %v332_v16, %v331_v55  ;;  %v1042_v11 = vadd.s32 3112173568, %v380_v63  ;;  %v386_v20 = vadd.s32 %v385_v2, %v384_v6  ;;  %v398_v13 = vand.u32 2147483647, %v1027_v54 }
  0x55   :  { %v368_v9 = vsel %vm367_vm7, %v1041_v61, %v366_v4  ;;  %v373_v14 = vshrl.u32 %v357_v1, 24  ;;  %vm388_vm10 = vcmp.lt.s32.totalorder %v377_v50, 1015021568  ;;  %v404_v10 = vshrl.u32 %v1027_v54, 20 }
  0x56   :  { %v370_v22 = vsel %vm369_vm8, 127, %v368_v9  ;;  %v387_v21 = vshrl.u32 %v386_v20, 20  ;;  %vm390_vm11 = vcmp.ge.s32.totalorder %v377_v50, 1139277825  ;;  %v401_v23 = vadd.f32 1182793728, %v398_v13 }
  0x57   :  { %v406_v25 = vadd.s32 3288858623, %v398_v13  ;;  %v351_v28 = vsel %vm350_vm6, 127, %v349_v8  ;;  %v372_v29 = vsel %vm371_vm9, 127, %v370_v22  ;;  %vm392_vm12 = vcmp.ne.f32.partialorder %v1300_v24, %v1300_v24 }
  0x58   :  { %v405_v57 = vand.u32 1, %v404_v10  ;;  %v389_v31 = vsel %vm388_vm10, %v1042_v11, %v387_v21  ;;  %v394_v12 = vshrl.u32 %v378_v17, 24  ;;  %v399_v32 = vand.u32 2147483648, %v1027_v54 }
  0x59   :  { %v391_v33 = vsel %vm390_vm11, 127, %v389_v31  ;;  %v1043_v18 = vadd.s32 3112173568, %v401_v23  ;;  %v353_v34 = vor.u32 %v352_v3, %v351_v28  ;;  %v374_v15 = vor.u32 %v373_v14, %v372_v29 }
  0x5a   :  { %v407_v26 = vadd.s32 %v406_v25, %v405_v57  ;;  %v393_v35 = vsel %vm392_vm12, 127, %v391_v33  ;;  %vm409_vm13 = vcmp.lt.s32.totalorder %v398_v13, 1015021568  ;;  %vm411_vm14 = vcmp.ge.s32.totalorder %v398_v13, 1139277825 }
  0x5b   :  { %v395_v37 = vor.u32 %v394_v12, %v393_v35  ;;  %vm413_vm15 = vcmp.ne.f32.partialorder %v1027_v54, %v1027_v54  ;;  %v415_v30 = vshrl.u32 %v399_v32, 24  ;;  %v354_v39 = vor.u32 4294967040, %v353_v34 }
  0x5c   :  { %v408_v36 = vshrl.u32 %v407_v26, 20  ;;  %v375_v40 = vor.u32 4294967040, %v374_v15 }
  0x5d   :  { %v396_v42 = vor.u32 4294967040, %v395_v37 }
  0x5e   :  { %v410_v38 = vsel %vm409_vm13, %v1043_v18, %v408_v36  ;;  %v419_v44 = vpack.c.b16 %v375_v40, %v354_v39 }
  0x5f   :  { %v412_v24 = vsel %vm411_vm14, 127, %v410_v38 }
  0x60   :  { %v414_v41 = vsel %vm413_vm15, 127, %v412_v24 }
  0x61   :  { %v416_v43 = vor.u32 %v415_v30, %v414_v41 }
  0x63   :  { %v417_v45 = vor.u32 4294967040, %v416_v43 }
  0x65   :  { %v420_v46 = vpack.c.b16 %v417_v45, %v396_v42 }
  0x67   :  { %v1326_v47 = vpack.c.b8 %v420_v46, %v419_v44 }
  0x68   :  { %423 = vst [vmem:[#allocation6] sm:$0xff] %v1260_v60 }
  0x6f   :  { %v424_v48 = vld [vmem:[#allocation6] sm:$0x3] }
  0x70   :  { %v425_v49 = vunpack.c.0.f8e4m3b11 %v424_v48 }
  0x72   :  { %v429_v50 = vand.u32 2147483647, %v425_v49  ;;  %vm431_vm0 = vcmp.ne.f32.partialorder %v425_v49, %v425_v49  ;;  %v432_v51 = vmul.f32 16.0, %v425_v49 }
  0x74   :  { %vm1329_vm1 = vcmp.gt.f32.partialorder %v429_v50, 29.0  ;;  %v1333_v52 = vsel %vm431_vm0, -0.0, %v432_v51 }
  0x75   :  { %v434_v53 = vsel %vm1329_vm1, nan, %v1333_v52 }
  0x76   :  { %453 = vst [vmem:[#allocation7] sm:$0xff] %v1260_v60 }
  0x7d   :  { %v455_v54 = vld [vmem:[#allocation7 + $0x2] sm:$0x3] }
  0x7e   :  { %v456_v55 = vunpack.c.0.f8e4m3b11 %v455_v54 }
  0x80   :  { %v460_v56 = vand.u32 2147483647, %v456_v55  ;;  %vm462_vm2 = vcmp.ne.f32.partialorder %v456_v55, %v456_v55  ;;  %v463_v58 = vmul.f32 16.0, %v456_v55 }
  0x82   :  { %vm1339_vm3 = vcmp.gt.f32.partialorder %v460_v56, 29.0  ;;  %v1343_v19 = vsel %vm462_vm2, -0.0, %v463_v58 }
  0x83   :  { %v465_v61 = vsel %vm1339_vm3, nan, %v1343_v19 }
  0x84   :  { %484 = vst [vmem:[#allocation8] sm:$0xff] %v1260_v60 }
  0x8b   :  { %v486_v62 = vld [vmem:[#allocation8 + $0x4] sm:$0x3] }
  0x8c   :  { %v487_v63 = vunpack.c.0.f8e4m3b11 %v486_v62 }
  0x8e   :  { %v491_v0 = vand.u32 2147483647, %v487_v63  ;;  %vm493_vm4 = vcmp.ne.f32.partialorder %v487_v63, %v487_v63  ;;  %v494_v16 = vmul.f32 16.0, %v487_v63 }
  0x90   :  { %vm1349_vm5 = vcmp.gt.f32.partialorder %v491_v0, 29.0  ;;  %v1353_v2 = vsel %vm493_vm4, -0.0, %v494_v16 }
  0x91   :  { %v496_v3 = vsel %vm1349_vm5, nan, %v1353_v2 }
  0x92   :  { %515 = vst [vmem:[#allocation9] sm:$0xff] %v1260_v60 }
  0x99   :  { %v517_v4 = vld [vmem:[#allocation9 + $0x6] sm:$0x3] }
  0x9a   :  { %v518_v6 = vunpack.c.0.f8e4m3b11 %v517_v4 }
  0x9c   :  { %v522_v8 = vand.u32 2147483647, %v518_v6  ;;  %vm524_vm6 = vcmp.ne.f32.partialorder %v518_v6, %v518_v6  ;;  %v525_v17 = vmul.f32 16.0, %v518_v6 }
  0x9e   :  { %vm1359_vm7 = vcmp.gt.f32.partialorder %v522_v8, 29.0  ;;  %v1363_v11 = vsel %vm524_vm6, -0.0, %v525_v17 }
  0x9f   :  { %v527_v20 = vsel %vm1359_vm7, nan, %v1363_v11 }
  0xa0   :  { %546 = vst [vmem:[#allocation10] sm:$0xff] %v1292_v5 }
  0xa7   :  { %v547_v13 = vld [vmem:[#allocation10] sm:$0x3] }
  0xa8   :  { %v548_v22 = vunpack.c.0.f8e4m3b11 %v547_v13 }
  0xaa   :  { %v552_v60 = vand.u32 2147483647, %v548_v22  ;;  %vm554_vm8 = vcmp.ne.f32.partialorder %v548_v22, %v548_v22  ;;  %v555_v14 = vmul.f32 16.0, %v548_v22 }
  0xac   :  { %vm1369_vm9 = vcmp.gt.f32.partialorder %v552_v60, 29.0  ;;  %v1373_v21 = vsel %vm554_vm8, -0.0, %v555_v14 }
  0xad   :  { %v557_v23 = vsel %vm1369_vm9, nan, %v1373_v21 }
  0xae   :  { %576 = vst [vmem:[#allocation11] sm:$0xff] %v1292_v5 }
  0xb5   :  { %v578_v25 = vld [vmem:[#allocation11 + $0x2] sm:$0x3] }
  0xb6   :  { %v579_v28 = vunpack.c.0.f8e4m3b11 %v578_v25 }
  0xb8   :  { %v583_v29 = vand.u32 2147483647, %v579_v28  ;;  %vm585_vm10 = vcmp.ne.f32.partialorder %v579_v28, %v579_v28  ;;  %v586_v57 = vmul.f32 16.0, %v579_v28 }
  0xba   :  { %vm1379_vm11 = vcmp.gt.f32.partialorder %v583_v29, 29.0  ;;  %v1383_v12 = vsel %vm585_vm10, -0.0, %v586_v57 }
  0xbb   :  { %v588_v32 = vsel %vm1379_vm11, nan, %v1383_v12 }
  0xbc   :  { %607 = vst [vmem:[#allocation12] sm:$0xff] %v1292_v5 }
  0xc3   :  { %v609_v33 = vld [vmem:[#allocation12 + $0x4] sm:$0x3] }
  0xc4   :  { %v610_v18 = vunpack.c.0.f8e4m3b11 %v609_v33 }
  0xc6   :  { %v614_v26 = vand.u32 2147483647, %v610_v18  ;;  %vm616_vm12 = vcmp.ne.f32.partialorder %v610_v18, %v610_v18  ;;  %v617_v34 = vmul.f32 16.0, %v610_v18 }
  0xc8   :  { %vm1389_vm13 = vcmp.gt.f32.partialorder %v614_v26, 29.0  ;;  %v1393_v35 = vsel %vm616_vm12, -0.0, %v617_v34 }
  0xc9   :  { %v619_v36 = vsel %vm1389_vm13, nan, %v1393_v35 }
  0xca   :  { %638 = vst [vmem:[#allocation13] sm:$0xff] %v1292_v5 }
  0xd1   :  { %v640_v37 = vld [vmem:[#allocation13 + $0x6] sm:$0x3] }
  0xd2   :  { %v641_v30 = vunpack.c.0.f8e4m3b11 %v640_v37 }
  0xd4   :  { %v645_v38 = vand.u32 2147483647, %v641_v30  ;;  %vm647_vm14 = vcmp.ne.f32.partialorder %v641_v30, %v641_v30  ;;  %v648_v39 = vmul.f32 16.0, %v641_v30 }
  0xd6   :  { %vm1399_vm15 = vcmp.gt.f32.partialorder %v645_v38, 29.0  ;;  %v1403_v24 = vsel %vm647_vm14, -0.0, %v648_v39 }
  0xd7   :  { %v650_v41 = vsel %vm1399_vm15, nan, %v1403_v24 }
  0xd8   :  { %669 = vst [vmem:[#allocation14] sm:$0xff] %v1316_v7 }
  0xdf   :  { %v670_v42 = vld [vmem:[#allocation14] sm:$0x3] }
  0xe0   :  { %v671_v43 = vunpack.c.0.f8e4m3b11 %v670_v42 }
  0xe2   :  { %v675_v5 = vand.u32 2147483647, %v671_v43  ;;  %vm677_vm0 = vcmp.ne.f32.partialorder %v671_v43, %v671_v43  ;;  %v678_v45 = vmul.f32 16.0, %v671_v43 }
  0xe4   :  { %vm1409_vm2 = vcmp.gt.f32.partialorder %v675_v5, 29.0  ;;  %v1413_v46 = vsel %vm677_vm0, -0.0, %v678_v45 }
  0xe5   :  { %v680_v48 = vsel %vm1409_vm2, nan, %v1413_v46 }
  0xe6   :  { %699 = vst [vmem:[#allocation15] sm:$0xff] %v1316_v7 }
  0xed   :  { %v701_v49 = vld [vmem:[#allocation15 + $0x2] sm:$0x3] }
  0xee   :  { %v702_v50 = vunpack.c.0.f8e4m3b11 %v701_v49 }
  0xf0   :  { %v706_v51 = vand.u32 2147483647, %v702_v50  ;;  %vm708_vm4 = vcmp.ne.f32.partialorder %v702_v50, %v702_v50  ;;  %v709_v54 = vmul.f32 16.0, %v702_v50 }
  0xf2   :  { %vm1419_vm6 = vcmp.gt.f32.partialorder %v706_v51, 29.0  ;;  %v710_v56 = vsel %vm708_vm4, -0.0, %v709_v54 }
  0xf3   :  { %v711_v58 = vsel %vm1419_vm6, nan, %v710_v56 }
  0xf4   :  { %730 = vst [vmem:[#allocation16] sm:$0xff] %v1316_v7 }
  0xfb   :  { %v732_v62 = vld [vmem:[#allocation16 + $0x4] sm:$0x3] }
  0xfc   :  { %v733_v63 = vunpack.c.0.f8e4m3b11 %v732_v62 }
  0xfe   :  { %v737_v0 = vand.u32 2147483647, %v733_v63  ;;  %vm739_vm8 = vcmp.ne.f32.partialorder %v733_v63, %v733_v63  ;;  %v740_v16 = vmul.f32 16.0, %v733_v63 }
 0x100   :  { %vm1426_vm10 = vcmp.gt.f32.partialorder %v737_v0, 29.0  ;;  %v741_v6 = vsel %vm739_vm8, -0.0, %v740_v16 }
 0x101   :  { %v742_v8 = vsel %vm1426_vm10, nan, %v741_v6 }
 0x102   :  { %761 = vst [vmem:[#allocation17] sm:$0xff] %v1316_v7 }
 0x109   :  { %v763_v17 = vld [vmem:[#allocation17 + $0x6] sm:$0x3] }
 0x10a   :  { %v764_v13 = vunpack.c.0.f8e4m3b11 %v763_v17 }
 0x10c   :  { %v768_v22 = vand.u32 2147483647, %v764_v13  ;;  %vm770_vm12 = vcmp.ne.f32.partialorder %v764_v13, %v764_v13  ;;  %v771_v60 = vmul.f32 16.0, %v764_v13 }
 0x10e   :  { %vm1433_vm14 = vcmp.gt.f32.partialorder %v768_v22, 29.0  ;;  %v772_v25 = vsel %vm770_vm12, -0.0, %v771_v60 }
 0x10f   :  { %v773_v28 = vsel %vm1433_vm14, nan, %v772_v25 }
 0x110   :  { %792 = vst [vmem:[#allocation18] sm:$0xff] %v1326_v47 }
 0x117   :  { %v793_v29 = vld [vmem:[#allocation18] sm:$0x3] }
 0x118   :  { %v794_v57 = vunpack.c.0.f8e4m3b11 %v793_v29 }
 0x11a   :  { %v798_v33 = vand.u32 2147483647, %v794_v57  ;;  %vm800_vm0 = vcmp.ne.f32.partialorder %v794_v57, %v794_v57  ;;  %v801_v7 = vmul.f32 16.0, %v794_v57 }
 0x11c   :  { %vm1440_vm4 = vcmp.gt.f32.partialorder %v798_v33, 29.0  ;;  %v802_v26 = vsel %vm800_vm0, -0.0, %v801_v7 }
 0x11d   :  { %v803_v34 = vsel %vm1440_vm4, nan, %v802_v26 }
 0x11e   :  { %822 = vst [vmem:[#allocation19] sm:$0xff] %v1326_v47 }
 0x125   :  { %v824_v37 = vld [vmem:[#allocation19 + $0x2] sm:$0x3] }
 0x126   :  { %v825_v30 = vunpack.c.0.f8e4m3b11 %v824_v37 }
 0x128   :  { %v829_v38 = vand.u32 2147483647, %v825_v30  ;;  %vm831_vm6 = vcmp.ne.f32.partialorder %v825_v30, %v825_v30  ;;  %v832_v39 = vmul.f32 16.0, %v825_v30 }
 0x12a   :  { %vm1447_vm8 = vcmp.gt.f32.partialorder %v829_v38, 29.0  ;;  %v833_v43 = vsel %vm831_vm6, -0.0, %v832_v39 }
 0x12b   :  { %v834_v5 = vsel %vm1447_vm8, nan, %v833_v43 }
 0x12c   :  { %853 = vst [vmem:[#allocation20] sm:$0xff] %v1326_v47 }
 0x133   :  { %v855_v45 = vld [vmem:[#allocation20 + $0x4] sm:$0x3] }
 0x134   :  { %v856_v49 = vunpack.c.0.f8e4m3b11 %v855_v45 }
 0x136   :  { %v860_v50 = vand.u32 2147483647, %v856_v49  ;;  %vm862_vm10 = vcmp.ne.f32.partialorder %v856_v49, %v856_v49  ;;  %v863_v51 = vmul.f32 16.0, %v856_v49 }
 0x138   :  { %vm1454_vm12 = vcmp.gt.f32.partialorder %v860_v50, 29.0  ;;  %v864_v55 = vsel %vm862_vm10, -0.0, %v863_v51 }
 0x139   :  { %v865_v56 = vsel %vm1454_vm12, nan, %v864_v55 }
 0x13a   :  { %884 = vst [vmem:[#allocation21] sm:$0xff] %v1326_v47  ;;  %v1079_v17 = vpack.c.bf16 %v465_v61, %v434_v53  ;;  %v1084_v47 = vpack.c.bf16 %v527_v20, %v496_v3  ;;  %v1089_v27 = vpack.c.bf16 %v588_v32, %v557_v23  ;;  %v1094_v52 = vpack.c.bf16 %v650_v41, %v619_v36  ;;  %s1176_s0 = smov [#allocation5]  }
 0x13b   :  { %v1099_v53 = vpack.c.bf16 %v711_v58, %v680_v48  ;;  %v1104_v59 = vpack.c.bf16 %v773_v28, %v742_v8  ;;  %v1109_v19 = vpack.c.bf16 %v834_v5, %v803_v34  ;;  %s1000_s13 = sshll.u32 %s1176_s0, 4  ;;  %s1001_s13 = int_to_ptr.vmem [resolvable:$true] %s1000_s13 }
 0x13c   :  { %1080 = vst [vmem:[#allocation5] sm:$0xff] %v1079_v17   ;;  %1116 = vst [vmem:[#allocation5 + $0x8] sm:$0xff] %v1084_v47   ;;  %s1149_s14 = scalar_lea.vmem %s1001_s13, 1024  ;;  %p1154_p6 = scmp.lt.s32.totalorder %s1001_s13, %s1001_s13 }
 0x13d   :  { %1117 = vst [vmem:[#allocation5 + $0x10] sm:$0xff] %v1089_v27   ;;  %1118 = vst [vmem:[#allocation5 + $0x18] sm:$0xff] %v1094_v52   ;;  %p1150_p5 = scmp.ne.s32.totalorder %s1001_s13, %s1149_s14  ;;  %p1155_p7 = scmp.lt.s32.totalorder %s1149_s14, %s1149_s14 }
 0x13e   :  { %1119 = vst [vmem:[#allocation5 + $0x20] sm:$0xff] %v1099_v53   ;;  %1120 = vst [vmem:[#allocation5 + $0x28] sm:$0xff] %v1104_v59  }
 0x13f   :  { %1121 = vst [vmem:[#allocation5 + $0x30] sm:$0xff] %v1109_v19   ;;  %p1156_p8 = por %p1155_p7, %p1154_p6 }
 0x141   :  { %v886_v62 = vld [vmem:[#allocation21 + $0x6] sm:$0x3]  ;;  %p1157_p9 = pnand %p1156_p8, %p1150_p5 }
 0x142   :  { %v887_v63 = vunpack.c.0.f8e4m3b11 %v886_v62 }
 0x144   :  { %v891_v0 = vand.u32 2147483647, %v887_v63  ;;  %vm893_vm14 = vcmp.ne.f32.partialorder %v887_v63, %v887_v63  ;;  %v894_v16 = vmul.f32 16.0, %v887_v63 }
 0x146   :  { %vm892_vm0 = vcmp.gt.f32.partialorder %v891_v0, 29.0  ;;  %v895_v4 = vsel %vm893_vm14, -0.0, %v894_v16 }
 0x147   :  { %v896_v6 = vsel %vm892_vm0, nan, %v895_v4 }
 0x148   :  { %v1114_v61 = vpack.c.bf16 %v896_v6, %v865_v56 }
 0x14a   :  { %1122 = vst [vmem:[#allocation5 + $0x38] sm:$0xff] %v1114_v61  }
 0x14b   :  { %1160 = shalt.err (!%p1157_p9)
}
 0x14c   :  { %s1177_s15 = smov 64   ;;  %s1178_s16 = smov 4  }
 0x14d   :  { %1006 = dma.vmem_to_hbm [thread:$0]  %s1001_s13, 1024, %s1501_s1, [#allocation4], %s1177_s15, %s1177_s15, %s1178_s16  }
 0x14e   :  { %1171 = dma.done.wait [#allocation4], 1024  }
 0x14f   :  { %1172 = vsyncadd [#allocation4], 4294966272 }
 0x150   :  { %1010 = vsyncpa [#allocation3], 1 }
 0x151   :  { %1011 = vsyncpa [#allocation4], 1 }

</bundles_post_ra>
